<compile_context>
chip_gen: v7x
topology: tpu7x:2x2x1
jax: 0.10.0
libtpu: 0.0.40
codegen_flags: <defaults>
</compile_context>

<pallas_src>
import functools

import jax
import jax.numpy as jnp
from jax import lax
from jax.experimental import pallas as pl
from jax.experimental.pallas import tpu as pltpu


_PAD_LABEL = int(jnp.iinfo(jnp.int32).min)   # sentinel label for padded rows
_VMEM_LIMIT = 48 * 1024 * 1024               # safe on v5e/v6e (128 MiB) and v7x (64 MiB)


def _round_up(v, m):
    return (v + m - 1) // m * m


# ---------------------------------------------------------------------------
# Stage 1: row-wise L2 normalization (== F.normalize(x, dim=1), eps=1e-12).
# Emits xn in the gram dtype (bf16 by default) plus r_i = sum(xn_i^2) computed
# from the *quantized* values so stage 2's d^2 = r_i + r_j - 2<xi,xj> is
# consistent with the matmul inputs.
# ---------------------------------------------------------------------------
def _normalize_kernel(x_ref, xn_ref, r_ref):
    x = x_ref[...].astype(jnp.float32)
    sq = jnp.sum(x * x, axis=1, keepdims=True)               # (tile, 1)
    inv = lax.rsqrt(jnp.maximum(sq, 1e-24))                  # 1/max(||x||,1e-12), EUP
    xn_q = (x * inv).astype(xn_ref.dtype)
    xn_ref[...] = xn_q
    xq = xn_q.astype(jnp.float32)
    r_ref[...] = jnp.sum(xq * xq, axis=1, keepdims=True)


# ---------------------------------------------------------------------------
# Stage 2: tiled pairwise hinge loss.  Row tile i is resident across a
# round-robin sweep of column tiles (i + jj) % nt; the gram runs on the MXU as
# A @ B^T (no transposed copy of xn anywhere).
# ---------------------------------------------------------------------------
def _pairwise_loss_kernel(scale_ref, xr_ref, xc_ref, r_row_ref, lab_col_ref,
                          lab_row_ref, out_ref, acc_ref, r_col_ref,
                          *, m0, m1, nt, pad_label):
    jj = pl.program_id(1)
    last = pl.num_programs(1) - 1

    @pl.when(jj == 0)
    def _init():
        acc_ref[...] = jnp.zeros_like(acc_ref)
        xr = xr_ref[...].astype(jnp.float32)
        r_col_ref[...] = jnp.sum(xr * xr, axis=1, keepdims=True)

    # Symmetry weight for this column offset: the self offset (jj == 0) and,
    # for even nt, the antipodal offset (visited from both rows) count once;
    # every other offset stands in for its mirror and counts twice.
    if nt % 2 == 0:
        w = jnp.where((jj == 0) | (jj == nt // 2), 1.0, 2.0)
    else:
        w = jnp.where(jj == 0, 1.0, 2.0)
    s1 = w * scale_ref[0]                                    # w / n1
    s2 = w * scale_ref[1]                                    # w / n2

    gram = lax.dot_general(                                  # (tm, tn) on the MXU
        xr_ref[...], xc_ref[...],
        dimension_numbers=(((1,), (1,)), ((), ())),          # A @ B^T
        preferred_element_type=jnp.float32)
    d2 = jnp.maximum(r_col_ref[...] + r_row_ref[...] - (gram + gram), 0.0)
    dx = jnp.sqrt(d2 + 1e-9)

    lab_c = lab_col_ref[...]                                 # (tm, 1) int32
    lab_r = lab_row_ref[...]                                 # (1, tn) int32
    same = lab_c == lab_r
    valid = (lab_c != pad_label) & (lab_r != pad_label)

    pos = jnp.maximum(dx - m0, 0.0) * s1
    neg = jnp.maximum(m1 - dx, 0.0) * s2
    acc_ref[...] += jnp.where(valid, jnp.where(same, pos, neg), 0.0)

    @pl.when(jj == last)
    def _finalize():
        total = jnp.sum(acc_ref[...])                        # one cross-lane reduce / row tile
        sub = lax.broadcasted_iota(jnp.int32, (8, 128), 0)
        lane = lax.broadcasted_iota(jnp.int32, (8, 128), 1)
        out_ref[...] = jnp.where((sub == 0) & (lane == 0), total, 0.0)


# ---------------------------------------------------------------------------
# Fused fast path for small problems: normalize + pairwise loss in ONE kernel
# (everything in f32; no HBM intermediates, single dispatch).
# ---------------------------------------------------------------------------
def _fused_small_kernel(scale_ref, x_ref, lab_col_ref, lab_row_ref, out_ref,
                        *, m0, m1, pad_label):
    x = x_ref[...].astype(jnp.float32)                       # (np, dp)
    sq = jnp.sum(x * x, axis=1, keepdims=True)
    inv = lax.rsqrt(jnp.maximum(sq, 1e-24))
    xn = x * inv
    gram = lax.dot_general(xn, xn,
                           dimension_numbers=(((1,), (1,)), ((), ())),
                           preferred_element_type=jnp.float32)
    n_pad = gram.shape[0]
    eye = (lax.broadcasted_iota(jnp.int32, (n_pad, n_pad), 0)
           == lax.broadcasted_iota(jnp.int32, (n_pad, n_pad), 1))
    diag = jnp.where(eye, gram, 0.0)
    r_col = jnp.sum(diag, axis=1, keepdims=True)             # (np, 1) = diag(gram)
    r_row = jnp.sum(diag, axis=0, keepdims=True)             # (1, np)
    d2 = jnp.maximum(r_col + r_row - (gram + gram), 0.0)
    dx = jnp.sqrt(d2 + 1e-9)

    lab_c = lab_col_ref[...]
    lab_r = lab_row_ref[...]
    same = lab_c == lab_r
    valid = (lab_c != pad_label) & (lab_r != pad_label)

    pos = jnp.maximum(dx - m0, 0.0) * scale_ref[0]
    neg = jnp.maximum(m1 - dx, 0.0) * scale_ref[1]
    total = jnp.sum(jnp.where(valid, jnp.where(same, pos, neg), 0.0))
    sub = lax.broadcasted_iota(jnp.int32, (8, 128), 0)
    lane = lax.broadcasted_iota(jnp.int32, (8, 128), 1)
    out_ref[...] = jnp.where((sub == 0) & (lane == 0), total, 0.0)


@functools.partial(
    jax.jit,
    static_argnames=("m0", "m1", "max_tile", "use_fused", "gram_dtype"))
def instance_discri_loss(x, labels, *, m0=0.25, m1=1.0, max_tile=512,
                         use_fused=None, gram_dtype=jnp.bfloat16):
    """x: (N, D) float, labels: (N,) int -> scalar float32 loss."""
    n, d = x.shape

    # ---- pair counts, O(N log N); f32 reciprocals computed once here ----
    s = jnp.sort(labels.astype(jnp.int32))
    left = jnp.searchsorted(s, s, side="left")
    right = jnp.searchsorted(s, s, side="right")
    n_same = jnp.sum((right - left).astype(jnp.int32))       # = sum_c count_c^2
    n_diff = jnp.int32(n * n) - n_same
    inv_n1 = 1.0 / jnp.maximum(n_same, 1).astype(jnp.float32)
    inv_n2 = 1.0 / jnp.maximum(n_diff, 1).astype(jnp.float32)
    scales = jnp.stack([inv_n1, inv_n2]).astype(jnp.float32)  # (2,) -> SMEM

    # ---- static tiling / padding ----
    d_pad = _round_up(d, 128)
    n8 = _round_up(n, 8)
    if n8 <= max_tile:
        nt, tile = 1, n8
    else:
        nt = -(-n // max_tile)                               # ceil(n / max_tile)
        tile = _round_up(-(-n // nt), 128)
    n_pad = nt * tile
    # TODO(synk): very large D (>~8K) needs a K-chunked gram accumulation to
    # stay inside VMEM; not implemented here.

    x_pad = jnp.pad(x, ((0, n_pad - n), (0, d_pad - d)))
    lab = jnp.pad(labels.astype(jnp.int32), (0, n_pad - n),
                  constant_values=_PAD_LABEL)
    lab_col = lab.reshape(n_pad, 1)
    lab_row = lab.reshape(1, n_pad)

    if use_fused is None:
        use_fused = (n_pad <= 256) and (n_pad * d_pad * 4 <= (2 << 20))

    if use_fused:
        out = pl.pallas_call(
            functools.partial(_fused_small_kernel, m0=float(m0), m1=float(m1),
                              pad_label=_PAD_LABEL),
            out_shape=jax.ShapeDtypeStruct((8, 128), jnp.float32),
            grid=(1,),
            in_specs=[
                pl.BlockSpec(memory_space=pltpu.MemorySpace.SMEM),   # 1/n1, 1/n2
                pl.BlockSpec((n_pad, d_pad), lambda i: (0, 0)),
                pl.BlockSpec((n_pad, 1), lambda i: (0, 0)),
                pl.BlockSpec((1, n_pad), lambda i: (0, 0)),
            ],
            out_specs=pl.BlockSpec((8, 128), lambda i: (0, 0)),
            compiler_params=pltpu.CompilerParams(
                vmem_limit_bytes=_VMEM_LIMIT),
        )(scales, x_pad, lab_col, lab_row)
        return jnp.sum(out)

    # ---- stage 1: normalize each row exactly once (xn stored in gram_dtype) ----
    xn, r = pl.pallas_call(
        _normalize_kernel,
        out_shape=(jax.ShapeDtypeStruct((n_pad, d_pad), gram_dtype),
                   jax.ShapeDtypeStruct((n_pad, 1), jnp.float32)),
        grid=(nt,),
        in_specs=[pl.BlockSpec((tile, d_pad), lambda i: (i, 0))],
        out_specs=(pl.BlockSpec((tile, d_pad), lambda i: (i, 0)),
                   pl.BlockSpec((tile, 1), lambda i: (i, 0))),
        compiler_params=pltpu.CompilerParams(
            dimension_semantics=("parallel",),
            vmem_limit_bytes=_VMEM_LIMIT),
    )(x_pad)

    r_row = r.reshape(1, n_pad)     # n_pad floats: negligible (unlike old xn.T)

    # ---- stage 2: round-robin column sweep over the symmetric pair matrix ----
    n_off = nt // 2 + 1
    col = lambda i, jj: (i + jj) % nt

    kernel = functools.partial(_pairwise_loss_kernel, m0=float(m0), m1=float(m1),
                               nt=nt, pad_label=_PAD_LABEL)

    partial_sums = pl.pallas_call(
        kernel,
        out_shape=jax.ShapeDtypeStruct((nt * 8, 128), jnp.float32),
        grid=(nt, n_off),
        in_specs=[
            pl.BlockSpec(memory_space=pltpu.MemorySpace.SMEM),            # 1/n1, 1/n2
            pl.BlockSpec((tile, d_pad), lambda i, jj: (i, 0)),            # xn rows (resident)
            pl.BlockSpec((tile, d_pad), lambda i, jj: (col(i, jj), 0)),   # xn cols (streamed)
            pl.BlockSpec((1, tile), lambda i, jj: (0, col(i, jj))),       # r of column tile
            pl.BlockSpec((tile, 1), lambda i, jj: (i, 0)),                # labels (col vec)
            pl.BlockSpec((1, tile), lambda i, jj: (0, col(i, jj))),       # labels (row vec)
        ],
        out_specs=pl.BlockSpec((8, 128), lambda i, jj: (i, 0)),
        scratch_shapes=[pltpu.VMEM((tile, tile), jnp.float32),            # accumulator
                        pltpu.VMEM((tile, 1), jnp.float32)],              # row-tile norms
        compiler_params=pltpu.CompilerParams(
            dimension_semantics=("parallel", "arbitrary"),
            vmem_limit_bytes=_VMEM_LIMIT),
    )(scales, xn, xn, r_row, lab_col, lab_row)

    return jnp.sum(partial_sums)


def _reference_loss(x, labels, m0, m1):
    """Pure-JAX reference mirroring the PyTorch forward exactly."""
    xn = x / jnp.maximum(jnp.linalg.norm(x, axis=1, keepdims=True), 1e-12)
    diff = xn[:, None, :] - xn[None, :, :]
    dx = jnp.sqrt(jnp.sum(diff * diff, axis=2) + 1e-9)
    mask = (labels[:, None] == labels[None, :]).astype(jnp.float32)
    mask_op = 1.0 - mask
    n1 = jnp.maximum(jnp.sum(mask), 1.0)
    n2 = jnp.maximum(jnp.sum(mask_op), 1.0)
    loss1 = jnp.sum(mask * jnp.maximum(dx - m0, 0.0)) / n1
    loss2 = jnp.sum(mask_op * jnp.maximum(m1 - dx, 0.0)) / n2
    return loss1 + loss2


if __name__ == "__main__":
    # configs.m0 / configs.m1 chosen in-script; shapes follow the module's own
    # test code (x = torch.randn((5, 128)), y = [1, 2, 0, 1, 2]).
    M0, M1 = 0.25, 1.0
    key = jax.random.PRNGKey(0)
    kx, kx2, kl2 = jax.random.split(key, 3)

    x = jax.random.normal(kx, (5, 128), dtype=jnp.float32)
    labels = jnp.array([1, 2, 0, 1, 2], dtype=jnp.int32)

    loss = jax.block_until_ready(instance_discri_loss(x, labels, m0=M0, m1=M1))
    ref = jax.block_until_ready(_reference_loss(x, labels, M0, M1))
    assert jnp.isfinite(loss)
    assert jnp.allclose(loss, ref, atol=1e-4, rtol=1e-4), (loss, ref)

    # Exercise the tiled multi-tile path (odd and even tile counts) with the
    # default bf16 gram, plus an f32-gram run at tight tolerance.
    x2 = jax.random.normal(kx2, (300, 256), dtype=jnp.float32)
    labels2 = jax.random.randint(kl2, (300,), 0, 7, dtype=jnp.int32)
    ref2 = jax.block_until_ready(_reference_loss(x2, labels2, M0, M1))
    for mt in (128, 256):                       # nt = 3 (odd) and nt = 2 (even)
        tiled = jax.block_until_ready(
            instance_discri_loss(x2, labels2, m0=M0, m1=M1,
                                 max_tile=mt, use_fused=False))
        assert jnp.allclose(tiled, ref2, atol=5e-3, rtol=5e-3), (mt, tiled, ref2)
    tiled_f32 = jax.block_until_ready(
        instance_discri_loss(x2, labels2, m0=M0, m1=M1, max_tile=128,
                             use_fused=False, gram_dtype=jnp.float32))
    assert jnp.allclose(tiled_f32, ref2, atol=1e-4, rtol=1e-4), (tiled_f32, ref2)

    print("KERNEL_OK")
</pallas_src>

<mosaic_0001>
module attributes {stable_mosaic.version = 11 : i64} {
  func.func @_fused_small_kernel(%arg0: i32, %arg1: memref<2xf32, #tpu.memory_space<smem>>, %arg2: memref<8x128xf32, #tpu.memory_space<vmem>>, %arg3: memref<8x1xi32, #tpu.memory_space<vmem>>, %arg4: memref<1x8xi32, #tpu.memory_space<vmem>>, %arg5: memref<8x128xf32, #tpu.memory_space<vmem>>) attributes {dimension_semantics = [#tpu.dimension_semantics<arbitrary>], iteration_bounds = array<i64: 1>, scalar_prefetch = 0 : i64, scratch_operands = 0 : i64, tpu.core_type = #tpu.core_type<tc>, window_params = [{transform_indices = @transform_0, window_bounds = array<i64: 2>}, {pipeline_mode = #tpu.pipeline_mode<synchronous>, transform_indices = @transform_1, window_bounds = array<i64: 8, 128>}, {pipeline_mode = #tpu.pipeline_mode<synchronous>, transform_indices = @transform_2, window_bounds = array<i64: 8, 1>}, {pipeline_mode = #tpu.pipeline_mode<synchronous>, transform_indices = @transform_3, window_bounds = array<i64: 1, 8>}, {pipeline_mode = #tpu.pipeline_mode<synchronous>, transform_indices = @transform_4, window_bounds = array<i64: 8, 128>}]} {
    %c0 = arith.constant 0 : index
    %c0_0 = arith.constant 0 : index
    %0 = vector.load %arg2[%c0, %c0_0] : memref<8x128xf32, #tpu.memory_space<vmem>>, vector<8x128xf32>
    %1 = arith.mulf %0, %0 : vector<8x128xf32>
    %cst = arith.constant dense<0.000000e+00> : vector<8xf32>
    %2 = vector.multi_reduction <add>, %1, %cst [1] : vector<8x128xf32> to vector<8xf32>
    %3 = vector.shape_cast %2 : vector<8xf32> to vector<8x1xf32>
    %cst_1 = arith.constant 1.000000e-24 : f32
    %4 = vector.broadcast %cst_1 : f32 to vector<8x1xf32>
    %5 = arith.maximumf %3, %4 : vector<8x1xf32>
    %6 = math.rsqrt %5 : vector<8x1xf32>
    %7 = vector.broadcast %6 : vector<8x1xf32> to vector<8x128xf32>
    %8 = arith.mulf %0, %7 : vector<8x128xf32>
    %cst_2 = arith.constant dense<0.000000e+00> : vector<8x8xf32>
    %9 = tpu.matmul %8, %8, %cst_2 {dimension_numbers = #tpu.dot_dimension_numbers<[1], [1], [0], [0], [0, 0, 1, 0], [], []>} : vector<8x128xf32>, vector<8x128xf32>, vector<8x8xf32> -> vector<8x8xf32>
    %10 = tpu.iota {dimensions = array<i32: 0>} : vector<8x8xi32>
    %11 = tpu.iota {dimensions = array<i32: 1>} : vector<8x8xi32>
    %12 = arith.cmpi eq, %10, %11 : vector<8x8xi32>
    %cst_3 = arith.constant 0.000000e+00 : f32
    %13 = vector.broadcast %cst_3 : f32 to vector<8x8xf32>
    %14 = arith.select %12, %9, %13 : vector<8x8xi1>, vector<8x8xf32>
    %cst_4 = arith.constant dense<0.000000e+00> : vector<8xf32>
    %15 = vector.multi_reduction <add>, %14, %cst_4 [1] : vector<8x8xf32> to vector<8xf32>
    %16 = vector.shape_cast %15 : vector<8xf32> to vector<8x1xf32>
    %cst_5 = arith.constant dense<0.000000e+00> : vector<8xf32>
    %17 = vector.multi_reduction <add>, %14, %cst_5 [0] : vector<8x8xf32> to vector<8xf32>
    %18 = vector.shape_cast %17 : vector<8xf32> to vector<1x8xf32>
    %19 = vector.broadcast %16 : vector<8x1xf32> to vector<8x8xf32>
    %20 = vector.broadcast %18 : vector<1x8xf32> to vector<8x8xf32>
    %21 = arith.addf %19, %20 : vector<8x8xf32>
    %22 = arith.addf %9, %9 : vector<8x8xf32>
    %23 = arith.subf %21, %22 : vector<8x8xf32>
    %cst_6 = arith.constant 0.000000e+00 : f32
    %24 = vector.broadcast %cst_6 : f32 to vector<8x8xf32>
    %25 = arith.maximumf %23, %24 : vector<8x8xf32>
    %cst_7 = arith.constant 9.99999971E-10 : f32
    %26 = vector.broadcast %cst_7 : f32 to vector<8x8xf32>
    %27 = arith.addf %25, %26 : vector<8x8xf32>
    %28 = math.sqrt %27 : vector<8x8xf32>
    %c0_8 = arith.constant 0 : index
    %c0_9 = arith.constant 0 : index
    %29 = vector.load %arg3[%c0_8, %c0_9] : memref<8x1xi32, #tpu.memory_space<vmem>>, vector<8x1xi32>
    %c0_10 = arith.constant 0 : index
    %c0_11 = arith.constant 0 : index
    %30 = vector.load %arg4[%c0_10, %c0_11] : memref<1x8xi32, #tpu.memory_space<vmem>>, vector<1x8xi32>
    %31 = vector.broadcast %29 : vector<8x1xi32> to vector<8x8xi32>
    %32 = vector.broadcast %30 : vector<1x8xi32> to vector<8x8xi32>
    %33 = arith.cmpi eq, %31, %32 : vector<8x8xi32>
    %c-2147483648_i32 = arith.constant -2147483648 : i32
    %34 = vector.broadcast %c-2147483648_i32 : i32 to vector<8x1xi32>
    %35 = arith.cmpi ne, %29, %34 : vector<8x1xi32>
    %c-2147483648_i32_12 = arith.constant -2147483648 : i32
    %36 = vector.broadcast %c-2147483648_i32_12 : i32 to vector<1x8xi32>
    %37 = arith.cmpi ne, %30, %36 : vector<1x8xi32>
    %38 = vector.broadcast %35 : vector<8x1xi1> to vector<8x8xi1>
    %39 = vector.broadcast %37 : vector<1x8xi1> to vector<8x8xi1>
    %40 = arith.andi %38, %39 : vector<8x8xi1>
    %cst_13 = arith.constant 2.500000e-01 : f32
    %41 = vector.broadcast %cst_13 : f32 to vector<8x8xf32>
    %42 = arith.subf %28, %41 : vector<8x8xf32>
    %cst_14 = arith.constant 0.000000e+00 : f32
    %43 = vector.broadcast %cst_14 : f32 to vector<8x8xf32>
    %44 = arith.maximumf %42, %43 : vector<8x8xf32>
    %c0_15 = arith.constant 0 : index
    %45 = memref.load %arg1[%c0_15] : memref<2xf32, #tpu.memory_space<smem>>
    %46 = vector.broadcast %45 : f32 to vector<8x8xf32>
    %47 = arith.mulf %44, %46 : vector<8x8xf32>
    %cst_16 = arith.constant 1.000000e+00 : f32
    %48 = vector.broadcast %cst_16 : f32 to vector<8x8xf32>
    %49 = arith.subf %48, %28 : vector<8x8xf32>
    %cst_17 = arith.constant 0.000000e+00 : f32
    %50 = vector.broadcast %cst_17 : f32 to vector<8x8xf32>
    %51 = arith.maximumf %49, %50 : vector<8x8xf32>
    %c1 = arith.constant 1 : index
    %52 = memref.load %arg1[%c1] : memref<2xf32, #tpu.memory_space<smem>>
    %53 = vector.broadcast %52 : f32 to vector<8x8xf32>
    %54 = arith.mulf %51, %53 : vector<8x8xf32>
    %55 = arith.select %33, %47, %54 : vector<8x8xi1>, vector<8x8xf32>
    %cst_18 = arith.constant 0.000000e+00 : f32
    %56 = vector.broadcast %cst_18 : f32 to vector<8x8xf32>
    %57 = arith.select %40, %55, %56 : vector<8x8xi1>, vector<8x8xf32>
    %58 = vector.shape_cast %57 : vector<8x8xf32> to vector<1x8x8xf32>
    %cst_19 = arith.constant dense<0.000000e+00> : vector<1xf32>
    %59 = vector.multi_reduction <add>, %58, %cst_19 [1, 2] : vector<1x8x8xf32> to vector<1xf32>
    %60 = vector.shape_cast %59 : vector<1xf32> to vector<1x1x1xf32>
    %61 = vector.extract %60[0, 0, 0] : f32 from vector<1x1x1xf32>
    %62 = tpu.iota {dimensions = array<i32: 0>} : vector<8x128xi32>
    %63 = tpu.iota {dimensions = array<i32: 1>} : vector<8x128xi32>
    %c0_i32 = arith.constant 0 : i32
    %64 = vector.broadcast %c0_i32 : i32 to vector<8x128xi32>
    %65 = arith.cmpi eq, %62, %64 : vector<8x128xi32>
    %c0_i32_20 = arith.constant 0 : i32
    %66 = vector.broadcast %c0_i32_20 : i32 to vector<8x128xi32>
    %67 = arith.cmpi eq, %63, %66 : vector<8x128xi32>
    %68 = arith.andi %65, %67 : vector<8x128xi1>
    %cst_21 = arith.constant 0.000000e+00 : f32
    %69 = vector.broadcast %61 : f32 to vector<8x128xf32>
    %70 = vector.broadcast %cst_21 : f32 to vector<8x128xf32>
    %71 = arith.select %68, %69, %70 : vector<8x128xi1>, vector<8x128xf32>
    %c0_22 = arith.constant 0 : index
    %c0_23 = arith.constant 0 : index
    %72 = vector.load %arg5[%c0_22, %c0_23] : memref<8x128xf32, #tpu.memory_space<vmem>>, vector<8x128xf32>
    tpu.vector_store %arg5[%c0_22, %c0_23], %71 {strides = array<i32>} : memref<8x128xf32, #tpu.memory_space<vmem>>, vector<8x128xf32>,
    return
  }
  func.func @transform_0(%arg0: i32) -> i32 {
    %c0_i32 = arith.constant 0 : i32
    %c0_i32_0 = arith.constant 0 : i32
    return %c0_i32 : i32
  }
  func.func @transform_1(%arg0: i32) -> (i32, i32) {
    %c0_i32 = arith.constant 0 : i32
    %c0_i32_0 = arith.constant 0 : i32
    %c0_i32_1 = arith.constant 0 : i32
    return %c0_i32, %c0_i32_0 : i32, i32
  }
  func.func @transform_2(%arg0: i32) -> (i32, i32) {
    %c0_i32 = arith.constant 0 : i32
    %c0_i32_0 = arith.constant 0 : i32
    %c0_i32_1 = arith.constant 0 : i32
    return %c0_i32, %c0_i32_0 : i32, i32
  }
  func.func @transform_3(%arg0: i32) -> (i32, i32) {
    %c0_i32 = arith.constant 0 : i32
    %c0_i32_0 = arith.constant 0 : i32
    %c0_i32_1 = arith.constant 0 : i32
    return %c0_i32, %c0_i32_0 : i32, i32
  }
  func.func @transform_4(%arg0: i32) -> (i32, i32) {
    %c0_i32 = arith.constant 0 : i32
    %c0_i32_0 = arith.constant 0 : i32
    %c0_i32_1 = arith.constant 0 : i32
    return %c0_i32, %c0_i32_0 : i32, i32
  }
}

</mosaic_0001>

<bundles_post_ra>
// kernel: custom-call
= control target key start
LH: loop header
LB: loop body
LE: loop exit
PB: predicated region body
PF: predicated region fallthrough
CT: control target
= control target key end

     0   :  { %s6_s0 = inlined_call_operand.vmem [shape: u32[5], index: 0, kind: output, shape index: {}]  }

// kernel: instance_discri_loss.1
= control target key start
LH: loop header
LB: loop body
LE: loop exit
PB: predicated region body
PF: predicated region fallthrough
CT: control target
= control target key end

     0   :  { %9 = vsyncpa [#allocation3], 0  ;;  %s282_s0 = inlined_call_operand.vmem [shape: f32[2], index: 0, kind: input, shape index: {}]   ;;  %s283_s1 = inlined_call_operand.vmem [shape: f32[8,128], index: 1, kind: input, shape index: {}]   ;;  %s284_s2 = inlined_call_operand.vmem [shape: s32[8,1], index: 2, kind: input, shape index: {}]   ;;  %s285_s3 = inlined_call_operand.vmem [shape: s32[1,8], index: 3, kind: input, shape index: {}]   ;;  %s286_s4 = inlined_call_operand.vmem [shape: f32[8,128], index: 4, kind: output, shape index: {}]  }
   0x1   :  { %s16_s17 = sshll.u32 %s282_s0, 4  ;;  %s17_s17 = int_to_ptr.vmem [resolvable:$true] %s16_s17 }
   0x2   :  { %s213_s18 = scalar_lea.vmem %s17_s17, 16  ;;  %p218_p1 = scmp.lt.s32.totalorder %s17_s17, %s17_s17 }
   0x3   :  { %p214_p0 = scmp.ne.s32.totalorder %s17_s17, %s213_s18  ;;  %p219_p2 = scmp.lt.s32.totalorder %s213_s18, %s213_s18 }
   0x5   :  { %p220_p3 = por %p219_p2, %p218_p1 }
   0x7   :  { %p221_p4 = pnand %p220_p3, %p214_p0 }
   0x9   :  { %224 = shalt.err (!%p221_p4)
}
   0xa   :  { %s227_s19 = smov [#allocation2]  }
   0xb   :  { %19 = dma.vmem_to_smem %s17_s17, 16, %s227_s19, [#allocation3]  }
   0xc   :  { %225 = dma.done.wait [#allocation3], 16  }
   0xd   :  { %226 = vsyncadd [#allocation3], 4294967280 }
   0xe   :  { %29 = sfence }
   0xf   :  { %v30_v0 = vld [vmem:[%s283_s1] sm:$0xff]  ;;  %v228_v2 = vmov 0.0   ;;  %vm229_vm0 = vmmov 0   ;;  %v230_v8 = vmov 0   ;;  %v107_v10 = vlaneseq  ;;  %s161_s23 = sld [smem:[#allocation2]]  ;;  %s193_s24 = sld [smem:[#allocation2 + $0x1]] }
  0x10   :  { %v31_v1 = vmul.f32 %v30_v0, %v30_v0  ;;  %196 = vmatprep.subr.mxu0 %v228_v2  ;;  %198 = vmatprep.mubr.msk.f32.mxu0 %vm229_vm0, %v228_v2  ;;  %v135_v7 = vld [vmem:[%s284_s2] sm:$0xff]  ;;  %vm113_vm3 = vcmask 64512  }
  0x11   :  { %207 = vset.pattern.permute.xlu1 %v230_v8  ;;  %vm145_vm1 = vcmp.ne.s32.totalorder %v135_v7, 2147483648  ;;  %208 = vset.pattern.permute.xlu0 %v230_v8  ;;  %v265_v11 = vshrl.u32 %v107_v10, 7  ;;  %v267_v12 = vand.u32 127, %v107_v10  ;;  %v136_v29 = vld [vmem:[%s285_s3] sm:$0x1] }
  0x12   :  { %32 = vadd.xlane.f32.xlu0 %v31_v1  ;;  %138 = vperm.xlu1 %207, %v135_v7   ;;  %v147_v9 = vsel %vm145_vm1, 1, %v230_v8  ;;  %vm146_vm4 = vcmp.ne.s32.totalorder %v136_v29, 2147483648 }
  0x13   :  { %vm111_vm2 = vcmp.eq.s32.totalorder %v265_v11, %v267_v12  ;;  %v142_v32 = vsub.s32 0, %v265_v11  ;;  %v152_v33 = vsel %vm146_vm4, 1, %v230_v8  ;;  %vm181_vm11 = vcmp.eq.s32.totalorder %v265_v11, 0 }
  0x14   :  { %vm182_vm12 = vcmp.eq.s32.totalorder %v267_v12, 0 }
  0x15   :  { %v156_v37 = vrot.slane %v152_v33, %v142_v32  ;;  %v143_v42 = vrot.slane %v136_v29, %v142_v32  ;;  %v162_v43 = vstv %s161_s23  ;;  %v167_v44 = vstv %s193_s24  ;;  %vm183_vm13 = vmand %vm181_vm11, %vm182_vm12 }
  0x16   :  { %149 = vperm.xlu1 %207, %v147_v9  }
  0x17   :  { %vm157_vm8 = vcmp.eq.s32.totalorder %v156_v37, 1 }
  0x91   :  { %v139_v30 = vpop.permute.xlu1 %138 }
  0x92   :  { %vm144_vm9 = vcmp.eq.s32.totalorder %v139_v30, %v143_v42 }
  0x95   :  { %v150_v39 = vpop.permute.xlu1 %149 }
  0x96   :  { %vm151_vm7 = vcmp.eq.s32.totalorder %v150_v39, 1 }
  0x97   :  { %vm158_vm10 = vmand %vm151_vm7, %vm157_vm8 }
  0x9f   :  { %v33_v3 = vpop.xlane.xlu0 %32 }
  0xa0   :  { %v34_v4 = vmax.f32 %v33_v3, 1e-24 }
  0xa2   :  { %209 = vrsqrt.f32 %v34_v4 }
  0xac   :  { %v210_v5 = vpop.eup %209 }
  0xad   :  { %v36_v6 = vmul.f32 %v210_v5, %v30_v0 }
  0xaf   :  { %197 = vmatpush3.xpose.msra.mxu0 %v36_v6 }
  0xb2   :  { %199 = vmatmul.mubr.f32.vlgmr.msra.gmra.mrb[0].mxu0 %v36_v6 }
 0x185   :  { %v103_v13 = vpop.f32.mrb[0].mxu0 }
 0x186   :  { %v112_v14 = vsel %vm111_vm2, %v103_v13, 0.0  ;;  %v200_v15 = vpop.f32.mrb[1].mxu0  ;;  %v124_v24 = vadd.f32 %v103_v13, %v103_v13 }
 0x187   :  { %v114_v16 = vsel %vm113_vm3, %v112_v14, 0.0 }
 0x188   :  { %115 = vadd.xlane.f32.xlu0 %v114_v16  ;;  %v117_v17 = vrot.slane %v114_v16, 4 }
 0x18a   :  { %v118_v18 = vadd.f32 %v117_v17, %v114_v16 }
 0x18c   :  { %v119_v19 = vrot.slane %v118_v18, 2 }
 0x18e   :  { %v120_v20 = vadd.f32 %v119_v19, %v118_v18 }
 0x190   :  { %v121_v21 = vrot.slane %v120_v20, 1 }
 0x192   :  { %v122_v22 = vadd.f32 %v121_v21, %v120_v20 }
 0x215   :  { %v116_v23 = vpop.xlane.xlu0 %115 }
 0x216   :  { %v123_v25 = vadd.f32 %v122_v22, %v116_v23 }
 0x218   :  { %v125_v26 = vsub.f32 %v123_v25, %v124_v24 }
 0x21a   :  { %v126_v27 = vmax.f32 %v125_v26, 0.0 }
 0x21c   :  { %v127_v28 = vadd.f32 1e-09, %v126_v27 }
 0x21e   :  { %211 = vrsqrt.f32 %v127_v28  ;;  %vm130_vm5 = vcmp.eq.f32.partialorder %v127_v28, inf  ;;  %v133_v35 = vand.u32 2147483648, %v127_v28  ;;  %vm132_vm6 = vcmp.eq.f32.partialorder %v127_v28, 0.0 }
 0x228   :  { %v212_v31 = vpop.eup %211 }
 0x229   :  { %v129_v34 = vmul.f32 %v212_v31, %v127_v28 }
 0x22b   :  { %v131_v36 = vsel %vm130_vm5, %v127_v28, %v129_v34 }
 0x22c   :  { %v134_v38 = vsel %vm132_vm6, %v133_v35, %v131_v36 }
 0x22d   :  { %v192_v40 = vadd.f32 -0.25, %v134_v38  ;;  %v164_v41 = vsub.f32 1.0, %v134_v38 }
 0x22f   :  { %v160_v45 = vmax.f32 %v192_v40, 0.0  ;;  %v165_v46 = vmax.f32 %v164_v41, 0.0 }
 0x231   :  { %v163_v47 = vmul.f32 %v162_v43, %v160_v45  ;;  %v168_v48 = vmul.f32 %v167_v44, %v165_v46 }
 0x233   :  { %v169_v49 = vsel %vm144_vm9, %v163_v47, %v168_v48 }
 0x234   :  { %v170_v50 = vsel %vm158_vm10, %v169_v49, 0.0 }
 0x235   :  { %v171_v51 = vsel %vm113_vm3, %v170_v50, 0.0 }
 0x236   :  { %172 = vadd.xlane.f32.xlu0 %v171_v51 }
 0x2c3   :  { %v173_v52 = vpop.xlane.xlu0 %172 }
 0x2c4   :  { %v174_v53 = vrot.slane %v173_v52, 4 }
 0x2c6   :  { %v175_v54 = vadd.f32 %v174_v53, %v173_v52 }
 0x2c8   :  { %v176_v55 = vrot.slane %v175_v54, 2 }
 0x2ca   :  { %v177_v56 = vadd.f32 %v176_v55, %v175_v54 }
 0x2cc   :  { %v178_v57 = vrot.slane %v177_v56, 1 }
 0x2ce   :  { %v179_v58 = vadd.f32 %v178_v57, %v177_v56 }
 0x2d0   :  { %201 = vpush %v179_v58 }
 0x301   :  { %s202_s3 = spop %201 }
 0x302   :  { %v184_v59 = vstv %s202_s3 }
 0x303   :  { %v185_v60 = vsel %vm183_vm13, %v184_v59, 0.0 }
 0x304   :  { %186 = vst [vmem:[%s286_s4] sm:$0xff] %v185_v60 }
 0x305   :  { %191 = vsyncpa [#allocation3], 1 }

</bundles_post_ra>
